<compile_context>
chip_gen: v7x
topology: tpu7x:2x2x1
jax: 0.10.0
libtpu: 0.0.40
codegen_flags: <defaults>
</compile_context>

<pallas_src>
import jax
import jax.numpy as jnp
import numpy as np
from jax.experimental import pallas as pl
from jax.experimental.pallas import tpu as pltpu


# ---------------------------------------------------------------------------
# VMEM budgeting
# ---------------------------------------------------------------------------
def _vmem_limits():
    """Return (vmem_limit_bytes, tile_budget_bytes) derived from physical VMEM."""
    try:
        cap = int(pltpu.get_tpu_info().vmem_capacity_bytes)
    except Exception:  # no TPU info available -> assume the smallest (v7x: 64 MiB / TC)
        cap = 64 << 20
    cap = max(cap, 32 << 20)
    # ~48 MiB on v7x, ~96 MiB on v5e/v6e; never below 32 MiB, never above 100 MiB.
    limit = max(32 << 20, min(cap * 3 // 4, 100 << 20))
    budget = limit - (4 << 20)  # headroom for compiler-internal scratch
    return limit, budget


def _pick_tile_m(m, q, d, kp, cdt_size, with_mlp, with_mask, budget):
    """Largest divisor of M whose full double-buffered working set fits `budget`."""
    fixed = 2 * kp * d * cdt_size            # resident keys block (x2 pipeline buffers)
    fixed += d * kp * cdt_size               # kt scratch (single buffer)
    if with_mask:
        fixed += 2 * q * kp * 4              # resident additive-bias block
    if with_mlp:
        fixed += 2 * (4 * d * d * cdt_size + 4 * d * 4)   # 4 weights + 4 biases
    avail = budget - fixed

    def per_tile(t):
        # raw query tile (f32) + output tile (f32), both double-buffered by the pipeline
        return 2 * t * q * d * 4 + 2 * t * q * kp * 4

    if per_tile(m) <= avail:
        return m
    for t in range(m - 1, 0, -1):
        if m % t == 0 and per_tile(t) <= avail:
            return t
    # TODO(synk): for prime M that does not fit, a cdiv grid with a remainder tile would
    # avoid degenerating to tile_m == 1.
    return 1


# ---------------------------------------------------------------------------
# Fused kernel: key MLP+transpose (once per n, into VMEM scratch) + query MLP + score + mask
# ---------------------------------------------------------------------------
def _make_cross_kernel(tile_m, q_len, kp, cdt, *, with_mlp, with_mask):
    def kernel(*refs):
        idx = 0
        q_ref = refs[idx]; idx += 1
        k_ref = refs[idx]; idx += 1
        bias_ref = None
        if with_mask:
            bias_ref = refs[idx]; idx += 1
        if with_mlp:
            kw1, kb1, kw2, kb2, qw1, qb1, qw2, qb2 = refs[idx:idx + 8]; idx += 8
        o_ref = refs[idx]; idx += 1
        kt_sc = refs[idx]                                            # VMEM (D, Kp), cdt

        # ---- encode + transpose keys once per batch element (mt == 0) ------------------
        @pl.when(pl.program_id(1) == 0)
        def _():
            k = k_ref[0]                                             # (Kp, D), compute dtype
            if with_mlp:
                h = jnp.dot(k, kw1[...], preferred_element_type=jnp.float32) + kb1[...]
                h = jnp.maximum(h, 0.0)                              # ReLU in f32 (VPU)
                ke = jnp.dot(h.astype(cdt), kw2[...],
                             preferred_element_type=jnp.float32) + kb2[...]
            else:
                ke = k.astype(jnp.float32)
            kt_sc[...] = ke.T.astype(kt_sc.dtype)                    # (D, Kp), one XLU transpose

        # ---- query MLP + score for this tile of query sets -----------------------------
        d = q_ref.shape[-1]
        rows = tile_m * q_len
        q = q_ref[...].reshape(rows, d)                              # (rows, D), f32

        if with_mlp:
            h = jnp.dot(q.astype(cdt), qw1[...],
                        preferred_element_type=jnp.float32) + qb1[...]
            h = jnp.maximum(h, 0.0)
            qe = jnp.dot(h.astype(cdt), qw2[...],
                         preferred_element_type=jnp.float32) + qb2[...]
        else:
            qe = q.astype(jnp.float32)

        score = jnp.dot(qe.astype(cdt), kt_sc[...],
                        preferred_element_type=jnp.float32)          # (rows, Kp)
        score = score.reshape(tile_m, q_len, kp)
        if with_mask:
            score = score + bias_ref[0][None, :, :]                  # additive 0 / -inf bias
        o_ref[0] = score.astype(o_ref.dtype)                         # lane-dense (Kp % 128 == 0)
    return kernel


# ---------------------------------------------------------------------------
# Full CrossLayer forward
# ---------------------------------------------------------------------------
def cross_layer_forward(keys, queries, queries_to_keys_mask=None, params=None, *,
                        compute_dtype=jnp.float32, pad_lane_dim=True):
    """keys: (N,K,D); queries: (M,N,Q,D); mask: (N,Q,K) or None.
    params = (kw1,kb1,kw2,kb2, qw1,qb1,qw2,qb2) or None (embed_size == 0 case).
    compute_dtype: jnp.float32 (exact) or jnp.bfloat16 (MXU fast path on v5e/v6e/v7x,
    f32 accumulation; elementwise work stays f32).
    Returns energy (N, M, Q, K) float32.
    Note: rows whose mask is all-zero are -inf everywhere (same as the torch reference);
    a downstream softmax over such rows yields NaN."""
    M, N, Q, D = queries.shape
    K = keys.shape[1]
    cdt = jnp.dtype(compute_dtype)
    cdt_size = cdt.itemsize
    with_mlp = params is not None
    with_mask = queries_to_keys_mask is not None

    # Lane-dense K: pad up to a multiple of 128 so the energy store is an unmasked vst
    # and MXU output columns are full; the padding is sliced off after the kernel.
    kp = K
    if pad_lane_dim and K % 128 != 0:
        kp = ((K + 127) // 128) * 128

    keys_in = keys.astype(cdt)                                       # pre-cast (halves DMA on bf16)
    if kp != K:
        keys_in = jnp.pad(keys_in, ((0, 0), (0, kp - K), (0, 0)))

    bias = None
    if with_mask:
        bias = jnp.where(queries_to_keys_mask == 0,
                         jnp.float32(-jnp.inf), jnp.float32(0.0))    # (N, Q, K) additive bias
        if kp != K:
            bias = jnp.pad(bias, ((0, 0), (0, 0), (0, kp - K)))

    vmem_limit, budget = _vmem_limits()
    tile_m = _pick_tile_m(M, Q, D, kp, cdt_size, with_mlp, with_mask, budget)
    grid = (N, M // tile_m)   # inner mt axis: keys / bias / weight blocks keep the same block
    #                           index -> their DMAs are skipped; kt scratch persists.

    in_specs = [
        pl.BlockSpec((tile_m, 1, Q, D), lambda n, mt: (mt, n, 0, 0)),   # raw query tile
        pl.BlockSpec((1, kp, D), lambda n, mt: (n, 0, 0)),              # keys (resident over mt)
    ]
    inputs = [queries, keys_in]
    if with_mask:
        in_specs.append(pl.BlockSpec((1, Q, kp), lambda n, mt: (n, 0, 0)))
        inputs.append(bias)
    if with_mlp:
        kw1, kb1, kw2, kb2, qw1, qb1, qw2, qb2 = params
        wspec = pl.BlockSpec((D, D), lambda n, mt: (0, 0))
        bspec = pl.BlockSpec((1, D), lambda n, mt: (0, 0))
        in_specs += [wspec, bspec, wspec, bspec, wspec, bspec, wspec, bspec]
        inputs += [kw1.astype(cdt), kb1.reshape(1, D).astype(jnp.float32),
                   kw2.astype(cdt), kb2.reshape(1, D).astype(jnp.float32),
                   qw1.astype(cdt), qb1.reshape(1, D).astype(jnp.float32),
                   qw2.astype(cdt), qb2.reshape(1, D).astype(jnp.float32)]

    flops = 2 * N * M * Q * D * kp
    if with_mlp:
        flops += 4 * N * M * Q * D * D + 4 * N * kp * D * D
    bytes_accessed = (4 * M * N * Q * D + cdt_size * N * kp * D + 4 * N * M * Q * kp
                      + (4 * N * Q * kp if with_mask else 0)
                      + (cdt_size * 4 * D * D + 4 * 4 * D if with_mlp else 0))

    energy = pl.pallas_call(
        _make_cross_kernel(tile_m, Q, kp, cdt, with_mlp=with_mlp, with_mask=with_mask),
        out_shape=jax.ShapeDtypeStruct((N, M, Q, kp), jnp.float32),
        grid=grid,
        in_specs=in_specs,
        out_specs=pl.BlockSpec((1, tile_m, Q, kp), lambda n, mt: (n, mt, 0, 0)),
        scratch_shapes=[pltpu.VMEM((D, kp), cdt)],                   # encoded keys, transposed
        compiler_params=pltpu.CompilerParams(
            # n is megacore-shardable; mt must stay "arbitrary" because the kt scratch
            # written at mt == 0 is consumed at mt > 0.
            dimension_semantics=("parallel", "arbitrary"),
            vmem_limit_bytes=vmem_limit,
        ),
        cost_estimate=pl.CostEstimate(flops=flops, transcendentals=0,
                                      bytes_accessed=bytes_accessed),
    )(*inputs)

    if kp != K:
        energy = energy[..., :K]
    return energy


# Pure-JAX reference (mirrors the PyTorch forward) for verification.
def cross_layer_reference(keys, queries, mask, params):
    if params is not None:
        kw1, kb1, kw2, kb2, qw1, qb1, qw2, qb2 = params

        def mlp(x, w1, b1, w2, b2):
            return jnp.maximum(x @ w1 + b1, 0.0) @ w2 + b2

        keys_e = mlp(keys, kw1, kb1, kw2, kb2)
        q_e = mlp(queries, qw1, qb1, qw2, qb2)
    else:
        keys_e = keys
        q_e = queries
    energy = jnp.einsum("mnqd,nkd->nmqk", q_e, keys_e)               # (N, M, Q, K)
    if mask is not None:
        energy = jnp.where((mask == 0)[:, None], -jnp.inf, energy)
    return energy


if __name__ == "__main__":
    N, K, Q, D, M = 2, 16, 8, 32, 3     # batch, #keys, #queries, embed, #query-sets

    key = jax.random.PRNGKey(0)
    ks = jax.random.split(key, 12)

    scale = 1.0 / np.sqrt(D)
    kw1 = jax.random.normal(ks[0], (D, D), jnp.float32) * scale
    kb1 = jax.random.normal(ks[1], (D,), jnp.float32) * 0.01
    kw2 = jax.random.normal(ks[2], (D, D), jnp.float32) * scale
    kb2 = jax.random.normal(ks[3], (D,), jnp.float32) * 0.01
    qw1 = jax.random.normal(ks[4], (D, D), jnp.float32) * scale
    qb1 = jax.random.normal(ks[5], (D,), jnp.float32) * 0.01
    qw2 = jax.random.normal(ks[6], (D, D), jnp.float32) * scale
    qb2 = jax.random.normal(ks[7], (D,), jnp.float32) * 0.01
    params = (kw1, kb1, kw2, kb2, qw1, qb1, qw2, qb2)

    keys_in = jax.random.normal(ks[8], (N, K, D), jnp.float32)
    queries_in = jax.random.normal(ks[9], (M, N, Q, D), jnp.float32)
    mask_in = (jax.random.uniform(ks[10], (N, Q, K)) > 0.3).astype(jnp.int32)

    # 1) f32 path with mask (exact against reference).
    out = jax.block_until_ready(cross_layer_forward(keys_in, queries_in, mask_in, params))
    ref = cross_layer_reference(keys_in, queries_in, mask_in, params)
    assert out.shape == (N, M, Q, K)
    np.testing.assert_allclose(np.asarray(out), np.asarray(ref), rtol=1e-5, atol=1e-5)

    # 2) f32, no mask (specialized kernel: no bias DMA, no add).
    out_nm = jax.block_until_ready(cross_layer_forward(keys_in, queries_in, None, params))
    ref_nm = cross_layer_reference(keys_in, queries_in, None, params)
    np.testing.assert_allclose(np.asarray(out_nm), np.asarray(ref_nm), rtol=1e-5, atol=1e-5)

    # 3) no-encoder path (embed_size == 0 in the torch module).
    out_ne = jax.block_until_ready(cross_layer_forward(keys_in, queries_in, mask_in, None))
    ref_ne = cross_layer_reference(keys_in, queries_in, mask_in, None)
    np.testing.assert_allclose(np.asarray(out_ne), np.asarray(ref_ne), rtol=1e-5, atol=1e-5)

    # 4) bf16 MXU inputs, f32 accumulate — loose tolerance vs f32 reference.
    out_bf = jax.block_until_ready(
        cross_layer_forward(keys_in, queries_in, mask_in, params, compute_dtype=jnp.bfloat16))
    np.testing.assert_allclose(np.asarray(out_bf), np.asarray(ref), rtol=5e-2, atol=2e-1)

    print("KERNEL_OK")
</pallas_src>

<mosaic_0001>
module attributes {stable_mosaic.version = 11 : i64} {
  func.func @kernel(%arg0: i32, %arg1: i32, %arg2: memref<3x1x8x32xf32, #tpu.memory_space<vmem>>, %arg3: memref<1x128x32xf32, #tpu.memory_space<vmem>>, %arg4: memref<1x8x128xf32, #tpu.memory_space<vmem>>, %arg5: memref<32x32xf32, #tpu.memory_space<vmem>>, %arg6: memref<1x32xf32, #tpu.memory_space<vmem>>, %arg7: memref<32x32xf32, #tpu.memory_space<vmem>>, %arg8: memref<1x32xf32, #tpu.memory_space<vmem>>, %arg9: memref<32x32xf32, #tpu.memory_space<vmem>>, %arg10: memref<1x32xf32, #tpu.memory_space<vmem>>, %arg11: memref<32x32xf32, #tpu.memory_space<vmem>>, %arg12: memref<1x32xf32, #tpu.memory_space<vmem>>, %arg13: memref<1x3x8x128xf32, #tpu.memory_space<vmem>>, %arg14: memref<32x128xf32, #tpu.memory_space<vmem>>) attributes {dimension_semantics = [#tpu.dimension_semantics<parallel>, #tpu.dimension_semantics<arbitrary>], iteration_bounds = array<i64: 2, 1>, scalar_prefetch = 0 : i64, scratch_operands = 1 : i64, tpu.core_type = #tpu.core_type<tc>, window_params = [{transform_indices = @transform_0, window_bounds = array<i64: 3, 1, 8, 32>}, {transform_indices = @transform_1, window_bounds = array<i64: 1, 128, 32>}, {transform_indices = @transform_2, window_bounds = array<i64: 1, 8, 128>}, {pipeline_mode = #tpu.pipeline_mode<synchronous>, transform_indices = @transform_3, window_bounds = array<i64: 32, 32>}, {pipeline_mode = #tpu.pipeline_mode<synchronous>, transform_indices = @transform_4, window_bounds = array<i64: 1, 32>}, {pipeline_mode = #tpu.pipeline_mode<synchronous>, transform_indices = @transform_5, window_bounds = array<i64: 32, 32>}, {pipeline_mode = #tpu.pipeline_mode<synchronous>, transform_indices = @transform_6, window_bounds = array<i64: 1, 32>}, {pipeline_mode = #tpu.pipeline_mode<synchronous>, transform_indices = @transform_7, window_bounds = array<i64: 32, 32>}, {pipeline_mode = #tpu.pipeline_mode<synchronous>, transform_indices = @transform_8, window_bounds = array<i64: 1, 32>}, {pipeline_mode = #tpu.pipeline_mode<synchronous>, transform_indices = @transform_9, window_bounds = array<i64: 32, 32>}, {pipeline_mode = #tpu.pipeline_mode<synchronous>, transform_indices = @transform_10, window_bounds = array<i64: 1, 32>}, {transform_indices = @transform_11, window_bounds = array<i64: 1, 3, 8, 128>}]} {
    %c0_i32 = arith.constant 0 : i32
    %0 = arith.cmpi eq, %arg1, %c0_i32 : i32
    %1 = arith.extui %0 : i1 to i32
    %c0_i32_0 = arith.constant 0 : i32
    %2 = arith.cmpi ne, %1, %c0_i32_0 : i32
    scf.if %2 {
      %c0_24 = arith.constant 0 : index
      %c0_25 = arith.constant 0 : index
      %c0_26 = arith.constant 0 : index
      %28 = vector.load %arg3[%c0_24, %c0_25, %c0_26] : memref<1x128x32xf32, #tpu.memory_space<vmem>>, vector<1x128x32xf32>
      %29 = vector.shape_cast %28 : vector<1x128x32xf32> to vector<128x32xf32>
      %c0_27 = arith.constant 0 : index
      %c0_28 = arith.constant 0 : index
      %30 = vector.load %arg5[%c0_27, %c0_28] : memref<32x32xf32, #tpu.memory_space<vmem>>, vector<32x32xf32>
      %cst_29 = arith.constant dense<0.000000e+00> : vector<128x32xf32>
      %31 = tpu.matmul %29, %30, %cst_29 {dimension_numbers = #tpu.dot_dimension_numbers<[1], [0], [0], [1], [0, 0, 1, 1], [], []>} : vector<128x32xf32>, vector<32x32xf32>, vector<128x32xf32> -> vector<128x32xf32>
      %c0_30 = arith.constant 0 : index
      %c0_31 = arith.constant 0 : index
      %32 = vector.load %arg6[%c0_30, %c0_31] : memref<1x32xf32, #tpu.memory_space<vmem>>, vector<1x32xf32>
      %33 = vector.broadcast %32 : vector<1x32xf32> to vector<128x32xf32>
      %34 = arith.addf %31, %33 : vector<128x32xf32>
      %cst_32 = arith.constant 0.000000e+00 : f32
      %35 = vector.broadcast %cst_32 : f32 to vector<128x32xf32>
      %36 = arith.maximumf %34, %35 : vector<128x32xf32>
      %c0_33 = arith.constant 0 : index
      %c0_34 = arith.constant 0 : index
      %37 = vector.load %arg7[%c0_33, %c0_34] : memref<32x32xf32, #tpu.memory_space<vmem>>, vector<32x32xf32>
      %cst_35 = arith.constant dense<0.000000e+00> : vector<128x32xf32>
      %38 = tpu.matmul %36, %37, %cst_35 {dimension_numbers = #tpu.dot_dimension_numbers<[1], [0], [0], [1], [0, 0, 1, 1], [], []>} : vector<128x32xf32>, vector<32x32xf32>, vector<128x32xf32> -> vector<128x32xf32>
      %c0_36 = arith.constant 0 : index
      %c0_37 = arith.constant 0 : index
      %39 = vector.load %arg8[%c0_36, %c0_37] : memref<1x32xf32, #tpu.memory_space<vmem>>, vector<1x32xf32>
      %40 = vector.broadcast %39 : vector<1x32xf32> to vector<128x32xf32>
      %41 = arith.addf %38, %40 : vector<128x32xf32>
      %42 = tpu.transpose %41, [1, 0] : vector<128x32xf32> -> vector<32x128xf32>
      %c0_38 = arith.constant 0 : index
      %c0_39 = arith.constant 0 : index
      %43 = vector.load %arg14[%c0_38, %c0_39] : memref<32x128xf32, #tpu.memory_space<vmem>>, vector<32x128xf32>
      tpu.vector_store %arg14[%c0_38, %c0_39], %42 {strides = array<i32>} : memref<32x128xf32, #tpu.memory_space<vmem>>, vector<32x128xf32>,
    } else {
    }
    %c0 = arith.constant 0 : index
    %c0_1 = arith.constant 0 : index
    %c0_2 = arith.constant 0 : index
    %c0_3 = arith.constant 0 : index
    %3 = vector.load %arg2[%c0, %c0_1, %c0_2, %c0_3] : memref<3x1x8x32xf32, #tpu.memory_space<vmem>>, vector<3x1x8x32xf32>
    %4 = vector.shape_cast %3 : vector<3x1x8x32xf32> to vector<24x32xf32>
    %c0_4 = arith.constant 0 : index
    %c0_5 = arith.constant 0 : index
    %5 = vector.load %arg9[%c0_4, %c0_5] : memref<32x32xf32, #tpu.memory_space<vmem>>, vector<32x32xf32>
    %cst = arith.constant dense<0.000000e+00> : vector<24x32xf32>
    %6 = tpu.matmul %4, %5, %cst {dimension_numbers = #tpu.dot_dimension_numbers<[1], [0], [0], [1], [0, 0, 1, 1], [], []>} : vector<24x32xf32>, vector<32x32xf32>, vector<24x32xf32> -> vector<24x32xf32>
    %c0_6 = arith.constant 0 : index
    %c0_7 = arith.constant 0 : index
    %7 = vector.load %arg10[%c0_6, %c0_7] : memref<1x32xf32, #tpu.memory_space<vmem>>, vector<1x32xf32>
    %8 = vector.broadcast %7 : vector<1x32xf32> to vector<24x32xf32>
    %9 = arith.addf %6, %8 : vector<24x32xf32>
    %cst_8 = arith.constant 0.000000e+00 : f32
    %10 = vector.broadcast %cst_8 : f32 to vector<24x32xf32>
    %11 = arith.maximumf %9, %10 : vector<24x32xf32>
    %c0_9 = arith.constant 0 : index
    %c0_10 = arith.constant 0 : index
    %12 = vector.load %arg11[%c0_9, %c0_10] : memref<32x32xf32, #tpu.memory_space<vmem>>, vector<32x32xf32>
    %cst_11 = arith.constant dense<0.000000e+00> : vector<24x32xf32>
    %13 = tpu.matmul %11, %12, %cst_11 {dimension_numbers = #tpu.dot_dimension_numbers<[1], [0], [0], [1], [0, 0, 1, 1], [], []>} : vector<24x32xf32>, vector<32x32xf32>, vector<24x32xf32> -> vector<24x32xf32>
    %c0_12 = arith.constant 0 : index
    %c0_13 = arith.constant 0 : index
    %14 = vector.load %arg12[%c0_12, %c0_13] : memref<1x32xf32, #tpu.memory_space<vmem>>, vector<1x32xf32>
    %15 = vector.broadcast %14 : vector<1x32xf32> to vector<24x32xf32>
    %16 = arith.addf %13, %15 : vector<24x32xf32>
    %c0_14 = arith.constant 0 : index
    %c0_15 = arith.constant 0 : index
    %17 = vector.load %arg14[%c0_14, %c0_15] : memref<32x128xf32, #tpu.memory_space<vmem>>, vector<32x128xf32>
    %cst_16 = arith.constant dense<0.000000e+00> : vector<24x128xf32>
    %18 = tpu.matmul %16, %17, %cst_16 {dimension_numbers = #tpu.dot_dimension_numbers<[1], [0], [0], [1], [0, 0, 1, 1], [], []>} : vector<24x32xf32>, vector<32x128xf32>, vector<24x128xf32> -> vector<24x128xf32>
    %19 = vector.shape_cast %18 : vector<24x128xf32> to vector<3x8x128xf32>
    %c0_17 = arith.constant 0 : index
    %c0_18 = arith.constant 0 : index
    %c0_19 = arith.constant 0 : index
    %20 = vector.load %arg4[%c0_17, %c0_18, %c0_19] : memref<1x8x128xf32, #tpu.memory_space<vmem>>, vector<1x8x128xf32>
    %21 = vector.shape_cast %20 : vector<1x8x128xf32> to vector<8x128xf32>
    %22 = vector.shape_cast %21 : vector<8x128xf32> to vector<1x8x128xf32>
    %23 = vector.broadcast %22 : vector<1x8x128xf32> to vector<3x8x128xf32>
    %24 = arith.addf %19, %23 : vector<3x8x128xf32>
    %c0_20 = arith.constant 0 : index
    %c0_21 = arith.constant 0 : index
    %c0_22 = arith.constant 0 : index
    %c0_23 = arith.constant 0 : index
    %25 = vector.load %arg13[%c0_20, %c0_21, %c0_22, %c0_23] : memref<1x3x8x128xf32, #tpu.memory_space<vmem>>, vector<1x3x8x128xf32>
    %26 = vector.shape_cast %25 : vector<1x3x8x128xf32> to vector<3x8x128xf32>
    %27 = vector.shape_cast %24 : vector<3x8x128xf32> to vector<1x3x8x128xf32>
    tpu.vector_store %arg13[%c0_20, %c0_21, %c0_22, %c0_23], %27 {strides = array<i32>} : memref<1x3x8x128xf32, #tpu.memory_space<vmem>>, vector<1x3x8x128xf32>,
    return
  }
  func.func @transform_0(%arg0: i32, %arg1: i32) -> (i32, i32, i32, i32) {
    %c0_i32 = arith.constant 0 : i32
    %c0_i32_0 = arith.constant 0 : i32
    %c0_i32_1 = arith.constant 0 : i32
    return %arg1, %arg0, %c0_i32, %c0_i32_0 : i32, i32, i32, i32
  }
  func.func @transform_1(%arg0: i32, %arg1: i32) -> (i32, i32, i32) {
    %c0_i32 = arith.constant 0 : i32
    %c0_i32_0 = arith.constant 0 : i32
    %c0_i32_1 = arith.constant 0 : i32
    return %arg0, %c0_i32, %c0_i32_0 : i32, i32, i32
  }
  func.func @transform_2(%arg0: i32, %arg1: i32) -> (i32, i32, i32) {
    %c0_i32 = arith.constant 0 : i32
    %c0_i32_0 = arith.constant 0 : i32
    %c0_i32_1 = arith.constant 0 : i32
    return %arg0, %c0_i32, %c0_i32_0 : i32, i32, i32
  }
  func.func @transform_3(%arg0: i32, %arg1: i32) -> (i32, i32) {
    %c0_i32 = arith.constant 0 : i32
    %c0_i32_0 = arith.constant 0 : i32
    %c0_i32_1 = arith.constant 0 : i32
    return %c0_i32, %c0_i32_0 : i32, i32
  }
  func.func @transform_4(%arg0: i32, %arg1: i32) -> (i32, i32) {
    %c0_i32 = arith.constant 0 : i32
    %c0_i32_0 = arith.constant 0 : i32
    %c0_i32_1 = arith.constant 0 : i32
    return %c0_i32, %c0_i32_0 : i32, i32
  }
  func.func @transform_5(%arg0: i32, %arg1: i32) -> (i32, i32) {
    %c0_i32 = arith.constant 0 : i32
    %c0_i32_0 = arith.constant 0 : i32
    %c0_i32_1 = arith.constant 0 : i32
    return %c0_i32, %c0_i32_0 : i32, i32
  }
  func.func @transform_6(%arg0: i32, %arg1: i32) -> (i32, i32) {
    %c0_i32 = arith.constant 0 : i32
    %c0_i32_0 = arith.constant 0 : i32
    %c0_i32_1 = arith.constant 0 : i32
    return %c0_i32, %c0_i32_0 : i32, i32
  }
  func.func @transform_7(%arg0: i32, %arg1: i32) -> (i32, i32) {
    %c0_i32 = arith.constant 0 : i32
    %c0_i32_0 = arith.constant 0 : i32
    %c0_i32_1 = arith.constant 0 : i32
    return %c0_i32, %c0_i32_0 : i32, i32
  }
  func.func @transform_8(%arg0: i32, %arg1: i32) -> (i32, i32) {
    %c0_i32 = arith.constant 0 : i32
    %c0_i32_0 = arith.constant 0 : i32
    %c0_i32_1 = arith.constant 0 : i32
    return %c0_i32, %c0_i32_0 : i32, i32
  }
  func.func @transform_9(%arg0: i32, %arg1: i32) -> (i32, i32) {
    %c0_i32 = arith.constant 0 : i32
    %c0_i32_0 = arith.constant 0 : i32
    %c0_i32_1 = arith.constant 0 : i32
    return %c0_i32, %c0_i32_0 : i32, i32
  }
  func.func @transform_10(%arg0: i32, %arg1: i32) -> (i32, i32) {
    %c0_i32 = arith.constant 0 : i32
    %c0_i32_0 = arith.constant 0 : i32
    %c0_i32_1 = arith.constant 0 : i32
    return %c0_i32, %c0_i32_0 : i32, i32
  }
  func.func @transform_11(%arg0: i32, %arg1: i32) -> (i32, i32, i32, i32) {
    %c0_i32 = arith.constant 0 : i32
    %c0_i32_0 = arith.constant 0 : i32
    %c0_i32_1 = arith.constant 0 : i32
    return %arg0, %arg1, %c0_i32, %c0_i32_0 : i32, i32, i32, i32
  }
}

</mosaic_0001>

<bundles_post_ra>
// kernel: tpu_custom_call.1
= control target key start
LH: loop header
LB: loop body
LE: loop exit
PB: predicated region body
PF: predicated region fallthrough
CT: control target
= control target key end

     0   :  { %s2169_s0 = inlined_call_operand.vmem [shape: f32[3,2,8,32], index: 0, kind: input, shape index: {}]   ;;  %s2170_s1 = inlined_call_operand.vmem [shape: f32[2,128,32], index: 1, kind: input, shape index: {}]   ;;  %s2171_s2 = inlined_call_operand.vmem [shape: f32[2,8,128], index: 2, kind: input, shape index: {}]   ;;  %s2172_s3 = inlined_call_operand.vmem [shape: f32[32,32], index: 3, kind: input, shape index: {}]   ;;  %s2173_s4 = inlined_call_operand.vmem [shape: f32[1,32], index: 4, kind: input, shape index: {}]   ;;  %s2174_s5 = inlined_call_operand.vmem [shape: f32[32,32], index: 5, kind: input, shape index: {}]   ;;  %s2175_s6 = inlined_call_operand.vmem [shape: f32[1,32], index: 6, kind: input, shape index: {}]   ;;  %s2176_s7 = inlined_call_operand.vmem [shape: f32[32,32], index: 7, kind: input, shape index: {}]   ;;  %s2177_s8 = inlined_call_operand.vmem [shape: f32[1,32], index: 8, kind: input, shape index: {}]   ;;  %s2178_s9 = inlined_call_operand.vmem [shape: f32[32,32], index: 9, kind: input, shape index: {}]   ;;  %s2179_s10 = inlined_call_operand.vmem [shape: f32[1,32], index: 10, kind: input, shape index: {}]   ;;  %s2180_s11 = inlined_call_operand.hbm [shape: f32[2,3,8,128], index: 11, kind: output, shape index: {}]  }
   0x1   :  { %2182 = sst [smem:[#allocation7_spill]] %s2169_s0 }
   0x2   :  { %2183 = sst [smem:[#allocation8_spill]] %s2170_s1 }
   0x3   :  { %2184 = sst [smem:[#allocation9_spill]] %s2172_s3 }
   0x4   :  { %16 = vsyncpa [#allocation5], 0 }
   0x5   :  { %18 = vsyncpa [#allocation5 + $0x1], 0  ;;  %s1875_s17 = smov 0   ;;  %s1877_s18 = smov 0  }
   0x6   :  { %s1879_s19 = smov 0   ;;  %s1881_s20 = smov 0  }
   0x7   :  { %s1883_s21 = smov 0   ;;  %s1885_s22 = smov 0  }
   0x8 LB: > { %s1394_s23 = sadd.s32 4294967295, %s1807_s22   ;;  %s1395_s24 = sadd.s32 4294967294, %s1807_s22   ;;  %s1807_s22 = sphi %s1885_s22, %s24_s22   ;;  %s1803_s21 = sphi %s1883_s21, %s2195_s21   ;;  %s1799_s20 = sphi %s1881_s20, %s2194_s20   ;;  %s1795_s19 = sphi %s1879_s19, %s2193_s19   ;;  %s1791_s18 = sphi %s1877_s18, %s2192_s18   ;;  %s1787_s17 = sphi %s1875_s17, %s2191_s17  }
   0x9   : > { %s36_s25 = sadd.s32 1, %s1803_s21  ;;  %s45_s26 = sadd.s32 1, %s1795_s19 }
   0xa   : > { %p38_p0 = scmp.ge.s32.totalorder %s36_s25, 2  ;;  %p52_p1 = scmp.ne.s32.totalorder %s1795_s19, %s1791_s18 }
   0xb   : > { %p53_p2 = scmp.eq.s32.totalorder %s1807_s22, 0  ;;  %p304_p3 = scmp.eq.s32.totalorder %s1394_s23, 1 }
   0xc   : > { %s2197_s25 = smov (%p38_p0, %s36_s25), 0  ;;  %p309_p6 = scmp.ne.s32.totalorder %s1791_s18, %s1787_s17 }
   0xd   : > { %p54_p4 = por %p53_p2, %p52_p1  ;;  %p1914_p5 = por %p304_p3, %p52_p1 }
   0xe   : > { %s41_s28 = ssub.s32 %s1803_s21, %s2197_s25  ;;  %p310_p8 = scmp.eq.s32.totalorder %s1395_s24, 1 }
   0xf   : > { %p43_p7 = scmp.eq.s32.totalorder %s41_s28, 0  ;;  %p1397_p10 = scmp.ge.s32.totalorder %s1807_s22, 2 }
  0x10   : > { %p1925_p9 = por %p310_p8, %p309_p6 }
  0x11   : > { %s1923_s29 = scalar_select %p43_p7, %s1795_s19, %s45_s26  }
  0x12   : > { %350 = sbr.rel (%p1397_p10) target bundleno = 37 (0x25), region = 48 }
  0x19   : > { %353 = sbr.rel (!%p54_p4) target bundleno = 37 (0x25), region = 52  ;;  %s355_s12 = sand.u32 (%p54_p4), 1, %s1795_s19  }
  0x1a   : > { %s1398_s13 = sshll.u32 (%p54_p4), %s1803_s21, 3  ;;  %s1666_s14 = smul.u32 (%p54_p4), 24, %s355_s12 }
  0x1b   : > { %s2187_s0 = sld [smem:[#allocation7_spill]] (%p54_p4) }
  0x1c   : > { %s357_s24 = scalar_lea.vmem (%p54_p4), [#allocation3], %s1666_s14 }
  0x21   : > { %s362_s23 = scalar_lea.vmem %s2187_s0, %s1398_s13 }
  0x22   : > { %v394_v0 = vld [vmem:[%s362_s23] sm:$0xff]  ;;  %v396_v1 = vld [vmem:[%s362_s23 + $0x10] sm:$0xff] }
  0x23   : > { %v398_v2 = vld [vmem:[%s362_s23 + $0x20] sm:$0xff]  ;;  %395 = vst [vmem:[%s357_s24] sm:$0xff] %v394_v0  ;;  %397 = vst [vmem:[%s357_s24 + $0x8] sm:$0xff] %v396_v1 }
  0x24   : > { %399 = vst [vmem:[%s357_s24 + $0x10] sm:$0xff] %v398_v2 }
  0x25 PF: > { %p1399_p11 = scmp.ge.s32.totalorder %s1807_s22, 1  ;;  %p419_p12 = scmp.lt.s32.totalorder %s1807_s22, 3 }
  0x27   : > { %p420_p13 = pnand %p1399_p11, %p419_p12 }
  0x28   : > { %s2188_s3 = sld [smem:[#allocation9_spill]] (!%p420_p13)  ;;  %p475_p0 = scmp.lt.s32.totalorder (!%p420_p13), %s1799_s20, 1  ;;  %v726_v8 = vld [vmem:[%s2174_s5] sm:$0xff] (!%p420_p13)  ;;  %v727_v9 = vld [vmem:[%s2174_s5 + $0x8] sm:$0xff] (!%p420_p13)  ;;  %vm516_vm0 = vcmask (!%p420_p13), 261120   ;;  %v1809_v18 = vmov (!%p420_p13), 0.0|0.0  }
  0x29   : > { %423 = sbr.rel (%p420_p13) target bundleno = 966 (0x3c6), region = 98  ;;  %v1636_v11 = vpack.c.bf16 (!%p420_p13), %v727_v9, %v726_v8  ;;  %s2189_s1 = sld [smem:[#allocation8_spill]] (!%p420_p13)  ;;  %v969_v12 = vld [vmem:[%s2176_s7] sm:$0xff] (!%p420_p13)  ;;  %v970_v13 = vld [vmem:[%s2176_s7 + $0x8] sm:$0xff] (!%p420_p13)  ;;  %v728_v32 = vld [vmem:[%s2174_s5 + $0x10] sm:$0xff] (!%p420_p13)  ;;  %vm1810_vm1 = vmmov (!%p420_p13), 0  }
  0x2a   : > { %v1976_v16 = vpack.c.bf16 (!%p420_p13), %v970_v13, %v969_v12  ;;  %v729_v33 = vld [vmem:[%s2174_s5 + $0x18] sm:$0xff] (!%p420_p13)  ;;  %v971_v35 = vld [vmem:[%s2176_s7 + $0x10] sm:$0xff] (!%p420_p13)  ;;  %s2181_s26 = sand.u32 (!%p420_p13), 1, %s1791_s18   ;;  %v1811_v38 = vmov (!%p420_p13), 0.0   ;;  %v1403_v41 = vld [vmem:[%s2173_s4] ss:$0 sm:$0xff] (!%p420_p13) }
  0x2b   : > { %1637 = vmatprep.subr.bf16.mxu1 (!%p420_p13), %v1636_v11  ;;  %v1640_v34 = vpack.c.bf16 (!%p420_p13), %v729_v33, %v728_v32  ;;  %v972_v36 = vld [vmem:[%s2176_s7 + $0x18] sm:$0xff] (!%p420_p13)  ;;  %s2027_s28 = smul.u32 (!%p420_p13), 24, %s2181_s26  ;;  %v1075_v32 = vld [vmem:[%s2178_s9 + $0x10] sm:$0xff] (!%p420_p13) }
  0x2c   : > { %1639 = vmatpush3.bf16.msra.mxu1 (!%p420_p13), %v1636_v11  ;;  %v1648_v37 = vpack.c.bf16 (!%p420_p13), %v972_v36, %v971_v35  ;;  %v1076_v33 = vld [vmem:[%s2178_s9 + $0x18] sm:$0xff] (!%p420_p13) }
  0x2d   : > { %1641 = vmatprep.subr.bf16.mxu1 (!%p420_p13), %v1640_v34  ;;  %v1654_v35 = vpack.c.bf16 (!%p420_p13), %v1076_v33, %v1075_v32  ;;  %s473_s15 = scalar_lea.vmem (!%p420_p13), [#allocation4], %s2027_s28 }
  0x2e   : > { %v505_v3 = vld [vmem:[%s2188_s3] sm:$0xff] (!%p420_p13)  ;;  %v506_v4 = vld [vmem:[%s2188_s3 + $0x8] sm:$0xff] (!%p420_p13)  ;;  %v507_v5 = vld [vmem:[%s2188_s3 + $0x10] sm:$0xff] (!%p420_p13) }
  0x2f   : > { %v1628_v6 = vpack.c.bf16 (!%p420_p13), %v506_v4, %v505_v3  ;;  %v508_v7 = vld [vmem:[%s2188_s3 + $0x18] sm:$0xff] (!%p420_p13) }
  0x30   : > { %v1632_v10 = vpack.c.bf16 %v508_v7, %v507_v5  ;;  %s1959_s12 = scalar_select %p475_p0, %s1799_s20, 1  ;;  %1643 = vmatpush3.bf16.msra.mxu1 %v1640_v34 }
  0x31   : > { %1629 = vmatprep.subr.bf16.mxu0 %v1628_v6  ;;  %1662 = vmatprep.subr.bf16.mxu1 %v1809_v18 }
  0x32   : > { %1631 = vmatpush3.bf16.msra.mxu0 %v1628_v6  ;;  %s1451_s13 = sshll.u32 %s1959_s12, 7  ;;  %s1402_s23 = sshll.u32 %s1959_s12, 3 }
  0x33   : > { %1633 = vmatprep.subr.bf16.mxu0 %v1632_v10  ;;  %s1965_s0 = scalar_lea.vmem %s2189_s1, %s1451_s13  ;;  %s2032_s13 = scalar_lea.vmem [#allocation3], %s2027_s28 }
  0x34   : > { %v489_v14 = vld [vmem:[%s1965_s0] sm:$0xff]  ;;  %v490_v15 = vld [vmem:[%s1965_s0 + $0x8] sm:$0xff]  ;;  %v491_v17 = vld [vmem:[%s1965_s0 + $0x10] sm:$0xff]  ;;  %s483_s14 = scalar_lea.vmem %s2171_s2, %s1402_s23  ;;  %s1289_s1 = sshll.u32 %s473_s15, 4  ;;  %s2113_s1 = int_to_ptr.vmem [resolvable:$true] %s1289_s1 }
  0x35   : > { %1521 = vmatprep.mubr.msk.f32.mxu0 %vm516_vm0, %v489_v14  ;;  %v492_v19 = vld [vmem:[%s1965_s0 + $0x18] sm:$0xff]  ;;  %v493_v20 = vld [vmem:[%s1965_s0 + $0x20] sm:$0xff]  ;;  %v494_v21 = vld [vmem:[%s1965_s0 + $0x28] sm:$0xff]  ;;  %s2190_s28 = sand.u32 1, %s1791_s18   ;;  %s1729_s23 = scalar_lea.vmem %s2113_s1, 384 }
  0x36   : > { %1635 = vmatpush3.bf16.msra.mxu0 %v1632_v10  ;;  %v495_v22 = vld [vmem:[%s1965_s0 + $0x30] sm:$0xff]  ;;  %v496_v23 = vld [vmem:[%s1965_s0 + $0x38] sm:$0xff]  ;;  %v497_v24 = vld [vmem:[%s1965_s0 + $0x40] sm:$0xff]  ;;  %s2122_s16 = scalar_lea.sflag [#allocation5], %s2190_s28  ;;  %p1730_p1 = scmp.ne.s32.totalorder %s2113_s1, %s1729_s23 }
  0x37   : > { %1644 = vmatprep.subr.bf16.mxu0 %v1809_v18  ;;  %v498_v25 = vld [vmem:[%s1965_s0 + $0x48] sm:$0xff]  ;;  %v499_v26 = vld [vmem:[%s1965_s0 + $0x50] sm:$0xff]  ;;  %v500_v27 = vld [vmem:[%s1965_s0 + $0x58] sm:$0xff] }
  0x38   : > { %v501_v28 = vld [vmem:[%s1965_s0 + $0x60] sm:$0xff]  ;;  %v502_v29 = vld [vmem:[%s1965_s0 + $0x68] sm:$0xff]  ;;  %v503_v30 = vld [vmem:[%s1965_s0 + $0x70] sm:$0xff]  ;;  %p1731_p2 = pnand %p1730_p1, %p1914_p5 }
  0x39   : > { %1522 = vmatmul.mubr.msk.f32.vlgmr.msra.gmra.mrb[0].mxu0 %vm516_vm0, %v490_v15  ;;  %v504_v31 = vld [vmem:[%s1965_s0 + $0x78] sm:$0xff]  ;;  %v967_v40 = vld [vmem:[%s2032_s13 + $0x8] sm:$0xff] }
  0x3a   : > { %1524 = vmatprep.mubr.msk.f32.mxu0 %vm516_vm0, %v491_v17  ;;  %1646 = vmatpush3.bf16.msra.mxu0 %v1976_v16  ;;  %v966_v39 = vld [vmem:[%s2032_s13] sm:$0xff]  ;;  %p1732_p3 = pneg %p1731_p2 }
  0x3b   : > { %1647 = vmatprep.subr.bf16.mxu0 %v1809_v18  ;;  %v1266_v33 = vld [vmem:[%s483_s14] sm:$0xff] }
  0x3d   : > { %1525 = vmatmul.mubr.msk.f32.gmra.mrb[2].mxu0 %vm516_vm0, %v492_v19 }
  0x3e   : > { %1527 = vmatprep.mubr.msk.f32.mxu0 %vm516_vm0, %v493_v20  ;;  %1649 = vmatpush3.bf16.msra.mxu0 %v1648_v37 }
  0x3f   : > { %1656 = vmatprep.subr.bf16.mxu0 %v1809_v18 }
  0x41   : > { %1528 = vmatmul.mubr.msk.f32.gmra.mrb[4].mxu0 %vm516_vm0, %v494_v21 }
  0x42   : > { %1530 = vmatprep.mubr.msk.f32.mxu0 %vm516_vm0, %v495_v22 }
  0x45   : > { %1531 = vmatmul.mubr.msk.f32.gmra.mrb[6].mxu0 %vm516_vm0, %v496_v23 }
  0x46   : > { %1533 = vmatprep.mubr.msk.f32.mxu0 %vm516_vm0, %v497_v24 }
  0x49   : > { %1534 = vmatmul.mubr.msk.f32.gmra.mrb[8].mxu0 %vm516_vm0, %v498_v25 }
  0x4a   : > { %1536 = vmatprep.mubr.msk.f32.mxu0 %vm516_vm0, %v499_v26 }
  0x4d   : > { %1537 = vmatmul.mubr.msk.f32.gmra.mrb[10].mxu0 %vm516_vm0, %v500_v27  ;;  %v968_v27 = vld [vmem:[%s2032_s13 + $0x10] sm:$0xff]  ;;  %s1668_s13 = smul.u32 384, %s1799_s20  ;;  %s1812_s20 = smov [#allocation4]  }
  0x4e   : > { %1539 = vmatprep.mubr.msk.f32.mxu0 %vm516_vm0, %v501_v28  ;;  %v1073_v28 = vld [vmem:[%s2178_s9] sm:$0xff]  ;;  %s1733_s0 = sshll.u32 %s1812_s20, 4  ;;  %s1734_s0 = int_to_ptr.vmem [resolvable:$false] %s1733_s0 }
  0x4f   : > { %s2118_s26 = scalar_lea.hbm %s2180_s11, %s1668_s13  ;;  %s1735_s24 = scalar_lea.vmem %s1734_s0, 768 }
  0x50   : > { %p1736_p4 = scmp.lt.s32.totalorder %s2113_s1, %s1734_s0  ;;  %p1737_p6 = scmp.lt.s32.totalorder %s1735_s24, %s1729_s23 }
  0x51   : > { %1540 = vmatmul.mubr.msk.f32.gmra.mrb[12].mxu0 %vm516_vm0, %v502_v29  ;;  %v1074_v29 = vld [vmem:[%s2178_s9 + $0x8] sm:$0xff] }
  0x52   : > { %1542 = vmatprep.mubr.msk.f32.mxu0 %vm516_vm0, %v503_v30  ;;  %v1651_v30 = vpack.c.bf16 %v1074_v29, %v1073_v28  ;;  %p1738_p7 = por %p1737_p6, %p1736_p4 }
  0x54   : > { %p1739_p8 = pnand %p1738_p7, %p1732_p3 }
  0x55   : > { %1543 = vmatmul.mubr.msk.f32.gmra.mrb[14].mxu0 %vm516_vm0, %v504_v31  ;;  %v1437_v31 = vld [vmem:[%s2177_s8] ss:$0 sm:$0xff] }
  0x56   : > { %1585 = vmatprep.mubr.msk.f32.mxu0 %vm1810_vm1, %v1811_v38 }
  0x59   : > { %1586 = vmatmul.mubr.msk.f32.vlgmr.msra.gmra.mrb[16].mxu0 %vm516_vm0, %v966_v39 }
  0x5a   : > { %1588 = vmatprep.mubr.msk.f32.mxu0 %vm1810_vm1, %v1811_v38 }
  0x5d   : > { %1589 = vmatmul.mubr.msk.f32.gmra.mrb[18].mxu0 %vm516_vm0, %v967_v40 }
  0x5e   : > { %1619 = vmatprep.mubr.msk.f32.mxu0 %vm1810_vm1, %v1811_v38 }
 0x10c   : > { %v1523_v42 = vpop.f32.mrb[0].mxu0 }
 0x10d   : > { %v637_v43 = vadd.f32 %v1523_v42, %v1403_v41  ;;  %v631_v44 = vpop.f32.mrb[1].mxu0 }
 0x10e   : > { %v632_v45 = vadd.f32 %v1403_v41, %v631_v44  ;;  %v1420_v44 = vld [vmem:[%s2175_s6] ss:$0 sm:$0xff] }
 0x10f   : > { %v711_v48 = vmax.f32 %v637_v43, 0.0 }
 0x110   : > { %v710_v46 = vmax.f32 %v632_v45, 0.0  ;;  %v1526_v47 = vpop.f32.mrb[2].mxu0 }
 0x111   : > { %v647_v49 = vadd.f32 %v1526_v47, %v1403_v41  ;;  %v641_v50 = vpop.f32.mrb[3].mxu0 }
 0x112   : > { %v642_v51 = vadd.f32 %v1403_v41, %v641_v50  ;;  %1553 = vmatprep.mubr.msk.f32.mxu1 %vm516_vm0, %v710_v46 }
 0x113   : > { %1554 = vmatmul.mubr.msk.f32.vlgmr.msra.gmra.mrb[0].mxu1 %vm516_vm0, %v711_v48  ;;  %v713_v54 = vmax.f32 %v647_v49, 0.0 }
 0x114   : > { %v712_v52 = vmax.f32 %v642_v51, 0.0  ;;  %1664 = vmatpush3.bf16.msra.mxu1 %v1976_v16  ;;  %v1529_v53 = vpop.f32.mrb[4].mxu0 }
 0x115   : > { %v657_v55 = vadd.f32 %v1529_v53, %v1403_v41  ;;  %v651_v56 = vpop.f32.mrb[5].mxu0  ;;  %1663 = vmatprep.subr.bf16.mxu1 %v1809_v18 }
 0x116   : > { %v652_v57 = vadd.f32 %v1403_v41, %v651_v56  ;;  %1556 = vmatprep.mubr.msk.f32.mxu1 %vm516_vm0, %v712_v52 }
 0x117   : > { %1557 = vmatmul.mubr.msk.f32.gmra.mrb[2].mxu1 %vm516_vm0, %v713_v54  ;;  %v715_v60 = vmax.f32 %v657_v55, 0.0 }
 0x118   : > { %v714_v58 = vmax.f32 %v652_v57, 0.0  ;;  %v1532_v59 = vpop.f32.mrb[6].mxu0  ;;  %1665 = vmatpush3.bf16.msra.mxu1 %v1648_v37 }
 0x119   : > { %v667_v61 = vadd.f32 %v1532_v59, %v1403_v41  ;;  %v661_v62 = vpop.f32.mrb[7].mxu0  ;;  %1650 = vmatprep.subr.bf16.mxu1 %v1809_v18 }
 0x11a   : > { %v662_v63 = vadd.f32 %v1403_v41, %v661_v62  ;;  %1559 = vmatprep.mubr.msk.f32.mxu1 %vm516_vm0, %v714_v58 }
 0x11b   : > { %1560 = vmatmul.mubr.msk.f32.gmra.mrb[4].mxu1 %vm516_vm0, %v715_v60  ;;  %v717_v2 = vmax.f32 %v667_v61, 0.0 }
 0x11c   : > { %v716_v0 = vmax.f32 %v662_v63, 0.0  ;;  %v1535_v1 = vpop.f32.mrb[8].mxu0 }
 0x11d   : > { %v677_v3 = vadd.f32 %v1535_v1, %v1403_v41  ;;  %v671_v4 = vpop.f32.mrb[9].mxu0 }
 0x11e   : > { %v672_v5 = vadd.f32 %v1403_v41, %v671_v4  ;;  %1562 = vmatprep.mubr.msk.f32.mxu1 %vm516_vm0, %v716_v0 }
 0x11f   : > { %1563 = vmatmul.mubr.msk.f32.gmra.mrb[6].mxu1 %vm516_vm0, %v717_v2  ;;  %v719_v8 = vmax.f32 %v677_v3, 0.0 }
 0x120   : > { %v718_v6 = vmax.f32 %v672_v5, 0.0  ;;  %v1538_v7 = vpop.f32.mrb[10].mxu0 }
 0x121   : > { %v687_v9 = vadd.f32 %v1538_v7, %v1403_v41  ;;  %v681_v10 = vpop.f32.mrb[11].mxu0 }
 0x122   : > { %v682_v11 = vadd.f32 %v1403_v41, %v681_v10  ;;  %1565 = vmatprep.mubr.msk.f32.mxu1 %vm516_vm0, %v718_v6 }
 0x123   : > { %1566 = vmatmul.mubr.msk.f32.gmra.mrb[8].mxu1 %vm516_vm0, %v719_v8  ;;  %v721_v14 = vmax.f32 %v687_v9, 0.0 }
 0x124   : > { %v720_v12 = vmax.f32 %v682_v11, 0.0  ;;  %v1541_v13 = vpop.f32.mrb[12].mxu0 }
 0x125   : > { %v697_v15 = vadd.f32 %v1541_v13, %v1403_v41  ;;  %v691_v16 = vpop.f32.mrb[13].mxu0 }
 0x126   : > { %v692_v17 = vadd.f32 %v1403_v41, %v691_v16  ;;  %1568 = vmatprep.mubr.msk.f32.mxu1 %vm516_vm0, %v720_v12 }
 0x127   : > { %1569 = vmatmul.mubr.msk.f32.gmra.mrb[10].mxu1 %vm516_vm0, %v721_v14  ;;  %v723_v21 = vmax.f32 %v697_v15, 0.0 }
 0x128   : > { %v722_v19 = vmax.f32 %v692_v17, 0.0  ;;  %v1544_v20 = vpop.f32.mrb[14].mxu0 }
 0x129   : > { %v707_v22 = vadd.f32 %v1544_v20, %v1403_v41  ;;  %v701_v23 = vpop.f32.mrb[15].mxu0 }
 0x12a   : > { %v702_v24 = vadd.f32 %v1403_v41, %v701_v23  ;;  %1571 = vmatprep.mubr.msk.f32.mxu1 %vm516_vm0, %v722_v19 }
 0x12b   : > { %1572 = vmatmul.mubr.msk.f32.gmra.mrb[12].mxu1 %vm516_vm0, %v723_v21  ;;  %v725_v26 = vmax.f32 %v707_v22, 0.0 }
 0x12c   : > { %v724_v25 = vmax.f32 %v702_v24, 0.0  ;;  %v1056_v34 = vpop.f32.mrb[16].mxu0 }
 0x12d   : > { %v1057_v36 = vadd.f32 %v1437_v31, %v1056_v34  ;;  %v1587_v37 = vpop.f32.mrb[17].mxu0 }
 0x12e   : > { %1574 = vmatprep.mubr.msk.f32.mxu1 %vm516_vm0, %v724_v25 }
 0x12f   : > { %1575 = vmatmul.mubr.msk.f32.gmra.mrb[14].mxu1 %vm516_vm0, %v725_v26  ;;  %v1070_v39 = vmax.f32 %v1057_v36, 0.0  ;;  %v1441_v26 = vld [vmem:[%s2179_s10] ss:$0 sm:$0xff] }
 0x130   : > { %1591 = vmatprep.mubr.msk.f32.mxu1 %vm1810_vm1, %v1811_v38  ;;  %v1061_v40 = vpop.f32.mrb[18].mxu0 }
 0x131   : > { %v1062_v41 = vadd.f32 %v1437_v31, %v1061_v40  ;;  %v1590_v42 = vpop.f32.mrb[19].mxu0 }
 0x133   : > { %1592 = vmatmul.mubr.msk.f32.vlgmr.msra.gmra.mrb[16].mxu1 %vm516_vm0, %v968_v27  ;;  %v1071_v43 = vmax.f32 %v1062_v41, 0.0 }
 0x134   : > { %1602 = vmatprep.mubr.msk.f32.mxu1 %vm1810_vm1, %v1811_v38  ;;  %1652 = vmatpush3.bf16.msra.mxu1 %v1651_v30 }
 0x135   : > { %1653 = vmatprep.subr.bf16.mxu1 %v1809_v18 }
 0x138   : > { %1655 = vmatpush3.bf16.msra.mxu1 %v1654_v35 }
 0x13b   : > { %1603 = vmatmul.mubr.msk.f32.vlgmr.msra.gmra.mrb[18].mxu1 %vm516_vm0, %v1070_v39 }
 0x13c   : > { %1605 = vmatprep.mubr.msk.f32.mxu1 %vm1810_vm1, %v1811_v38 }
 0x13f   : > { %1606 = vmatmul.mubr.msk.f32.gmra.mrb[20].mxu1 %vm516_vm0, %v1071_v43 }
 0x140   : > { %1608 = vmatprep.mubr.msk.f32.mxu1 %vm1810_vm1, %v1811_v38 }
 0x1e6   : > { %v1555_v45 = vpop.f32.mrb[0].mxu1 }
 0x1e7   : > { %v851_v46 = vpop.f32.mrb[1].mxu1  ;;  %v857_v50 = vadd.f32 %v1555_v45, %v1420_v44 }
 0x1e8   : > { %v852_v47 = vadd.f32 %v1420_v44, %v851_v46 }
 0x1ea   : > { %v1558_v48 = vpop.f32.mrb[2].mxu1  ;;  %930 = vxpose.xlu0.b32.start [1/16] (narrow) %v852_v47, 32 }
 0x1eb   : > { %v861_v49 = vpop.f32.mrb[3].mxu1  ;;  %v867_v56 = vadd.f32 %v1558_v48, %v1420_v44 }
 0x1ec   : > { %v862_v53 = vadd.f32 %v1420_v44, %v861_v49 }
 0x1ee   : > { %v1561_v51 = vpop.f32.mrb[4].mxu1  ;;  %931 = vxpose.xlu0.b32.cont [2/16] (narrow) %v857_v50, 32 }
 0x1ef   : > { %v871_v52 = vpop.f32.mrb[5].mxu1  ;;  %v877_v62 = vadd.f32 %v1561_v51, %v1420_v44 }
 0x1f0   : > { %v872_v59 = vadd.f32 %v1420_v44, %v871_v52 }
 0x1f2   : > { %v1564_v54 = vpop.f32.mrb[6].mxu1  ;;  %932 = vxpose.xlu0.b32.cont [3/16] (narrow) %v862_v53, 32 }
 0x1f3   : > { %v881_v55 = vpop.f32.mrb[7].mxu1  ;;  %v887_v4 = vadd.f32 %v1564_v54, %v1420_v44 }
 0x1f4   : > { %v882_v1 = vadd.f32 %v1420_v44, %v881_v55 }
 0x1f6   : > { %v1567_v57 = vpop.f32.mrb[8].mxu1  ;;  %933 = vxpose.xlu0.b32.cont [4/16] (narrow) %v867_v56, 32 }
 0x1f7   : > { %v891_v58 = vpop.f32.mrb[9].mxu1  ;;  %v897_v10 = vadd.f32 %v1567_v57, %v1420_v44 }
 0x1f8   : > { %v892_v8 = vadd.f32 %v1420_v44, %v891_v58 }
 0x1fa   : > { %v1570_v60 = vpop.f32.mrb[10].mxu1  ;;  %934 = vxpose.xlu0.b32.cont [5/16] (narrow) %v872_v59, 32 }
 0x1fb   : > { %v901_v61 = vpop.f32.mrb[11].mxu1  ;;  %v907_v12 = vadd.f32 %v1570_v60, %v1420_v44 }
 0x1fc   : > { %v902_v11 = vadd.f32 %v1420_v44, %v901_v61 }
 0x1fe   : > { %v1573_v63 = vpop.f32.mrb[12].mxu1  ;;  %935 = vxpose.xlu0.b32.cont [6/16] (narrow) %v877_v62, 32 }
 0x1ff   : > { %v911_v0 = vpop.f32.mrb[13].mxu1  ;;  %v917_v14 = vadd.f32 %v1573_v63, %v1420_v44 }
 0x200   : > { %v912_v13 = vadd.f32 %v1420_v44, %v911_v0 }
 0x202   : > { %v1576_v2 = vpop.f32.mrb[14].mxu1  ;;  %936 = vxpose.xlu0.b32.cont [7/16] (narrow) %v882_v1, 32 }
 0x203   : > { %v921_v3 = vpop.f32.mrb[15].mxu1  ;;  %v927_v16 = vadd.f32 %v1576_v2, %v1420_v44 }
 0x204   : > { %v922_v15 = vadd.f32 %v1420_v44, %v921_v3 }
 0x206   : > { %937 = vxpose.xlu0.b32.cont [8/16] (narrow) %v887_v4, 32  ;;  %v1066_v5 = vpop.f32.mrb[16].mxu1 }
 0x207   : > { %v1067_v6 = vadd.f32 %v1437_v31, %v1066_v5  ;;  %v1593_v7 = vpop.f32.mrb[17].mxu1 }
 0x209   : > { %v1072_v9 = vmax.f32 %v1067_v6, 0.0 }
 0x20a   : > { %938 = vxpose.xlu0.b32.cont [9/16] (narrow) %v892_v8, 32 }
 0x20b   : > { %1609 = vmatmul.mubr.msk.f32.gmra.mrb[22].mxu1 %vm516_vm0, %v1072_v9 }
 0x20e   : > { %939 = vxpose.xlu0.b32.cont [10/16] (narrow) %v897_v10, 32  ;;  %v1159_v17 = vpop.f32.mrb[18].mxu1 }
 0x20f   : > { %v1604_v19 = vpop.f32.mrb[19].mxu1  ;;  %v1160_v29 = vadd.f32 %v1441_v26, %v1159_v17 }
 0x212   : > { %940 = vxpose.xlu0.b32.cont [11/16] (narrow) %v902_v11, 32  ;;  %v1164_v20 = vpop.f32.mrb[20].mxu1 }
 0x213   : > { %v1607_v21 = vpop.f32.mrb[21].mxu1  ;;  %v1165_v30 = vadd.f32 %v1441_v26, %v1164_v20 }
 0x216   : > { %941 = vxpose.xlu0.b32.cont [12/16] (narrow) %v907_v12, 32 }
 0x21a   : > { %942 = vxpose.xlu0.b32.cont [13/16] (narrow) %v912_v13, 32 }
 0x21e   : > { %943 = vxpose.xlu0.b32.cont [14/16] (narrow) %v917_v14, 32 }
 0x222   : > { %944 = vxpose.xlu0.b32.cont [15/16] (narrow) %v922_v15, 32 }
 0x226   : > { %945 = vxpose.xlu0.b32.end [16/16] (narrow) %v927_v16, 32 }
 0x26a   : > { %v946_v22 = vpop.trf.xlu0 }
 0x26e   : > { %v947_v23 = vpop.trf.xlu0 }
 0x26f   : > { %v1657_v24 = vpack.c.bf16 %v947_v23, %v946_v22 }
 0x271   : > { %1658 = vmatpush3.bf16.msra.mxu0 %v1657_v24 }
 0x272   : > { %v948_v25 = vpop.trf.xlu0  ;;  %1659 = vmatprep.subr.bf16.mxu0 %v1809_v18 }
 0x276   : > { %v949_v27 = vpop.trf.xlu0 }
 0x277   : > { %v1660_v28 = vpack.c.bf16 %v949_v27, %v948_v25 }
 0x279   : > { %1661 = vmatpush3.bf16.msra.mxu0 %v1660_v28 }
 0x27c   : > { %1620 = vmatmul.mubr.msk.f32.vlgmr.msra.gmra.mrb[20].mxu0 %vm516_vm0, %v1160_v29 }
 0x27d   : > { %1622 = vmatprep.mubr.msk.f32.mxu0 %vm1810_vm1, %v1811_v38 }
 0x280   : > { %1623 = vmatmul.mubr.msk.f32.gmra.mrb[22].mxu0 %vm516_vm0, %v1165_v30 }
 0x281   : > { %1625 = vmatprep.mubr.msk.f32.mxu0 %vm1810_vm1, %v1811_v38 }
 0x2de   : > { %v1169_v18 = vpop.f32.mrb[22].mxu1 }
 0x2df   : > { %v1170_v31 = vadd.f32 %v1441_v26, %v1169_v18  ;;  %v1610_v32 = vpop.f32.mrb[23].mxu1 }
 0x2e1   : > { %1626 = vmatmul.mubr.msk.f32.gmra.mrb[24].mxu0 %vm516_vm0, %v1170_v31 }
 0x34f   : > { %v1252_v34 = vpop.f32.mrb[20].mxu0 }
 0x350   : > { %v1267_v35 = vadd.f32 %v1266_v33, %v1252_v34  ;;  %v1621_v36 = vpop.f32.mrb[21].mxu0 }
 0x352   : > { %1270 = vst [vmem:[%s473_s15] sm:$0xff] %v1267_v35 }
 0x353   : > { %v1257_v38 = vpop.f32.mrb[22].mxu0 }
 0x354   : > { %v1268_v37 = vadd.f32 %v1266_v33, %v1257_v38  ;;  %v1624_v39 = vpop.f32.mrb[23].mxu0 }
 0x356   : > { %1271 = vst [vmem:[%s473_s15 + $0x8] sm:$0xff] %v1268_v37 }
 0x3b4   : > { %v1262_v40 = vpop.f32.mrb[24].mxu0 }
 0x3b5   : > { %v1269_v41 = vadd.f32 %v1266_v33, %v1262_v40  ;;  %v1627_v42 = vpop.f32.mrb[25].mxu0 }
 0x3b7   : > { %1272 = vst [vmem:[%s473_s15 + $0x10] sm:$0xff] %v1269_v41 }
 0x3b8   : > { %1742 = shalt.err (!%p1739_p8)
}
 0x3b9   : > { %s1743_s14 = scalar_lea.hbm %s2118_s26, 384  ;;  %s1747_s12 = scalar_lea.hbm %s2180_s11, 768 }
 0x3ba   : > { %p1744_p11 = scmp.ne.s32.totalorder %s2118_s26, %s1743_s14  ;;  %p1748_p0 = scmp.lt.u32.totalorder %s2118_s26, %s2180_s11 }
 0x3bb   : > { %p1749_p1 = scmp.lt.u32.totalorder %s1747_s12, %s1743_s14  ;;  %p1751_p3 = scmp.lt.u32.totalorder %s1743_s14, %s2118_s26 }
 0x3bc   : > { %p1745_p12 = pnand %p1744_p11, %p1914_p5 }
 0x3bd   : > { %p1750_p2 = por %p1749_p1, %p1748_p0 }
 0x3be   : > { %p1746_p13 = pneg %p1745_p12 }
 0x3bf   : > { %p1752_p4 = por %p1751_p3, %p1750_p2 }
 0x3c1   : > { %p1753_p6 = pnand %p1752_p4, %p1746_p13 }
 0x3c3   : > { %1756 = shalt.err (!%p1753_p6)
}
 0x3c4   : > { %s1813_s23 = smov 128   ;;  %s1814_s20 = smov 8  }
 0x3c5   : > { %1669 = dma.vmem_to_hbm [thread:$0]  (%p1914_p5), %s2113_s1, 384, %s2118_s26, %s2122_s16, %s1813_s23, %s1813_s23, %s1814_s20  }
 0x3c6 PF: > { %s1304_s0 = sand.u32 1, %s1787_s17   ;;  %p1672_p7 = pnand %p1397_p10, %p1925_p9 }
 0x3c7   : > { %s1305_s24 = scalar_lea.sflag [#allocation5], %s1304_s0 }
 0x3c8   : > { %1782 = dma.done.wait (!%p1672_p7), %s1305_s24, 384  }
 0x3c9   : > { %1784 = vsyncadd (!%p1672_p7), %s1305_s24, 4294966912  ;;  %s24_s22 = sadd.s32 1, %s1807_s22   ;;  %s2191_s17 = smov %s1791_s18 }
 0x3ca   : > { %p21_p8 = scmp.ge.s32.totalorder %s24_s22, 4   ;;  %s2192_s18 = smov %s1795_s19 }
 0x3cb   : > { %s2193_s19 = smov %s1923_s29  ;;  %s2194_s20 = smov %s1803_s21 }
 0x3cc   : > { %s2195_s21 = smov %s2197_s25  ;;  %23 = sbr.rel (!%p21_p8) target bundleno = 8 (0x8), region = 152 }
 0x3d3   :  { %1310 = vsyncpa [#allocation5], 1 }
 0x3d4   :  { %1312 = vsyncpa [#allocation5 + $0x1], 1 }

</bundles_post_ra>
